<compile_context>
chip_gen: v7x
topology: tpu7x:2x2x1
jax: 0.10.0
libtpu: 0.0.40
codegen_flags: <defaults>
</compile_context>

<pallas_src>
import functools

import jax
import jax.numpy as jnp
from jax import lax
from jax.experimental import pallas as pl
from jax.experimental.pallas import tpu as pltpu


_DEFAULT_VMEM_BYTES = 64 * 1024 * 1024  # most conservative (v7x per-TC VMEM)


def _vmem_capacity_bytes():
    try:
        return int(pltpu.get_tpu_info().vmem_capacity_bytes)
    except Exception:
        return _DEFAULT_VMEM_BYTES


def _round_up(x, m):
    return ((x + m - 1) // m) * m


def _linear_kernel(x_ref, w_ref, b_ref, o_ref):
    # x_ref: (TM, K), w_ref: (K, TN), b_ref: (1, TN), o_ref: (TM, TN)
    acc = jnp.dot(x_ref[...], w_ref[...], preferred_element_type=jnp.float32)
    acc = acc + b_ref[...].astype(jnp.float32)      # fused f32 bias epilogue
    o_ref[...] = acc.astype(o_ref.dtype)


@functools.partial(jax.jit, static_argnames=("use_bf16",))
def feature_encoder_out(feature, weight, bias, *, use_bf16=False):
    """y = feature @ weight.T + bias.

    feature: (..., D_in), weight: (D_out, D_in), bias: (D_out,)
    """
    *lead, d_in = feature.shape
    d_out = weight.shape[0]
    x = feature.reshape(-1, d_in)
    n = x.shape[0]
    out_dtype = feature.dtype

    # One wrapper-side D^2 transpose, amortized over all row tiles; the kernel
    # then does a plain (M,K)x(K,N) contraction with no in-loop transpose.
    wt = weight.T                                     # (d_in, d_out)

    if use_bf16 and x.dtype == jnp.float32:
        x = x.astype(jnp.bfloat16)
        wt = wt.astype(jnp.bfloat16)

    # Lane-dense output: pad d_out to a multiple of 128 (sliced off below).
    d_out_p = _round_up(d_out, 128)
    if d_out_p != d_out:
        wt = jnp.pad(wt, ((0, 0), (0, d_out_p - d_out)))
        bias_p = jnp.pad(bias, (0, d_out_p - d_out))
    else:
        bias_p = bias
    b2d = bias_p.reshape(1, d_out_p)

    x_bytes = jnp.dtype(x.dtype).itemsize
    w_bytes = jnp.dtype(wt.dtype).itemsize
    b_bytes = jnp.dtype(b2d.dtype).itemsize
    o_bytes = jnp.dtype(out_dtype).itemsize

    cap = _vmem_capacity_bytes()
    budget = cap - 8 * 1024 * 1024                    # headroom for Mosaic internals

    # ---- weight column tile (TN) -------------------------------------------
    # Budget for 2 pipeline buffers of the weight strip; keep it fully resident
    # (single column grid step) only if it uses at most half the budget,
    # otherwise stream column tiles via a second grid axis.
    if 2 * d_in * d_out_p * w_bytes <= budget // 2:
        tn = d_out_p                                  # weight fully resident
    else:
        tn = (budget // 2) // (2 * d_in * w_bytes)
        tn = min(d_out_p, max(128, (tn // 128) * 128))
        # TODO(synk): if even a 128-wide weight strip cannot fit (enormous
        # d_in), add a K grid axis with an f32 accumulator + pl.when epilogue.

    w_resident = 2 * d_in * tn * w_bytes              # double-buffered allocation
    b_resident = 2 * tn * b_bytes

    # ---- row tile (TM) from the remaining VMEM ------------------------------
    remaining = max(budget - w_resident - b_resident, 1 << 20)
    per_row = 2 * (d_in * x_bytes + tn * o_bytes)     # double-buffered x + out
    tm = min(remaining // per_row, 2048)              # cap: diminishing returns
    if n <= 8:
        tm = n                                        # single full-extent block
    else:
        if tm >= 256:
            tm = (tm // 256) * 256                    # MXU-friendly multiple
        else:
            tm = max(8, (tm // 8) * 8)
        if n <= 2 * tm:
            # Guarantee >= 2 row tiles so the parallel row axis can split
            # across both TensorCores on v7x (harmless on 1-TC v5e/v6e).
            tm = max(8, _round_up(-(-n // 2), 8))
        tm = min(tm, _round_up(n, 8))

    grid = (pl.cdiv(n, tm), pl.cdiv(d_out_p, tn))

    vmem_needed = (w_resident + b_resident
                   + 2 * tm * (d_in * x_bytes + tn * o_bytes))
    vmem_limit = int(min(max(vmem_needed + (4 << 20), 32 << 20),
                         cap - (2 << 20)))            # never above physical VMEM

    out = pl.pallas_call(
        _linear_kernel,
        out_shape=jax.ShapeDtypeStruct((n, d_out_p), out_dtype),
        grid_spec=pltpu.PrefetchScalarGridSpec(
            num_scalar_prefetch=0,
            grid=grid,
            in_specs=[
                pl.BlockSpec((tm, d_in), lambda i, j: (i, 0)),   # pipelined rows
                pl.BlockSpec((d_in, tn), lambda i, j: (0, j)),   # weight (resident or streamed cols)
                pl.BlockSpec((1, tn), lambda i, j: (0, j)),      # bias strip
            ],
            out_specs=pl.BlockSpec((tm, tn), lambda i, j: (i, j)),
        ),
        compiler_params=pltpu.CompilerParams(
            dimension_semantics=("parallel", "parallel"),
            vmem_limit_bytes=vmem_limit,
        ),
        cost_estimate=pl.CostEstimate(
            flops=2 * n * d_in * d_out_p,
            transcendentals=0,
            bytes_accessed=(x.size * x_bytes + wt.size * w_bytes
                            + b2d.size * b_bytes + n * d_out_p * o_bytes),
        ),
    )(x, wt, b2d)

    if d_out_p != d_out:
        out = out[:, :d_out]
    return out.reshape(*lead, d_out)


if __name__ == "__main__":
    key = jax.random.PRNGKey(0)
    k_x, k_w, k_b = jax.random.split(key, 3)

    # Small but lane-dense shapes: hidden dim is a multiple of 128 and there
    # are enough rows (N = 1024) that the row grid has >= 2 pipelined tiles.
    batch, seq, dim = 4, 256, 128
    feature = jax.random.normal(k_x, (batch, seq, dim), dtype=jnp.float32)

    # Deterministic PyTorch-like init: uniform(-1/sqrt(dim), 1/sqrt(dim))
    bound = 1.0 / jnp.sqrt(jnp.float32(dim))
    weight = jax.random.uniform(k_w, (dim, dim), jnp.float32, -bound, bound)
    bias = jax.random.uniform(k_b, (dim,), jnp.float32, -bound, bound)

    out = feature_encoder_out(feature, weight, bias)
    jax.block_until_ready(out)

    # Reference: y = x @ W.T + b at highest XLA precision.
    ref = (jnp.einsum("bsd,od->bso", feature, weight,
                      precision=lax.Precision.HIGHEST)
           + bias)
    assert out.shape == (batch, seq, dim)
    assert jnp.allclose(out, ref, atol=1e-4, rtol=1e-4), (
        float(jnp.max(jnp.abs(out - ref))))

    print("KERNEL_OK")
</pallas_src>

<mosaic_0001>
module attributes {stable_mosaic.version = 11 : i64} {
  func.func @_linear_kernel(%arg0: i32, %arg1: i32, %arg2: memref<512x128xf32, #tpu.memory_space<vmem>>, %arg3: memref<128x128xf32, #tpu.memory_space<vmem>>, %arg4: memref<1x128xf32, #tpu.memory_space<vmem>>, %arg5: memref<512x128xf32, #tpu.memory_space<vmem>>) attributes {dimension_semantics = [#tpu.dimension_semantics<parallel>, #tpu.dimension_semantics<parallel>], iteration_bounds = array<i64: 2, 1>, scalar_prefetch = 0 : i64, scratch_operands = 0 : i64, tpu.core_type = #tpu.core_type<tc>, window_params = [{transform_indices = @transform_0, window_bounds = array<i64: 512, 128>}, {transform_indices = @transform_1, window_bounds = array<i64: 128, 128>}, {transform_indices = @transform_2, window_bounds = array<i64: 1, 128>}, {transform_indices = @transform_3, window_bounds = array<i64: 512, 128>}]} {
    %c0 = arith.constant 0 : index
    %c0_0 = arith.constant 0 : index
    %0 = vector.load %arg2[%c0, %c0_0] : memref<512x128xf32, #tpu.memory_space<vmem>>, vector<512x128xf32>
    %c0_1 = arith.constant 0 : index
    %c0_2 = arith.constant 0 : index
    %1 = vector.load %arg3[%c0_1, %c0_2] : memref<128x128xf32, #tpu.memory_space<vmem>>, vector<128x128xf32>
    %cst = arith.constant dense<0.000000e+00> : vector<512x128xf32>
    %2 = tpu.matmul %0, %1, %cst {dimension_numbers = #tpu.dot_dimension_numbers<[1], [0], [0], [1], [0, 0, 1, 1], [], []>} : vector<512x128xf32>, vector<128x128xf32>, vector<512x128xf32> -> vector<512x128xf32>
    %c0_3 = arith.constant 0 : index
    %c0_4 = arith.constant 0 : index
    %3 = vector.load %arg4[%c0_3, %c0_4] : memref<1x128xf32, #tpu.memory_space<vmem>>, vector<1x128xf32>
    %4 = vector.broadcast %3 : vector<1x128xf32> to vector<512x128xf32>
    %5 = arith.addf %2, %4 : vector<512x128xf32>
    %c0_5 = arith.constant 0 : index
    %c0_6 = arith.constant 0 : index
    %6 = vector.load %arg5[%c0_5, %c0_6] : memref<512x128xf32, #tpu.memory_space<vmem>>, vector<512x128xf32>
    tpu.vector_store %arg5[%c0_5, %c0_6], %5 {strides = array<i32>} : memref<512x128xf32, #tpu.memory_space<vmem>>, vector<512x128xf32>,
    return
  }
  func.func @transform_0(%arg0: i32, %arg1: i32) -> (i32, i32) {
    %c0_i32 = arith.constant 0 : i32
    %c0_i32_0 = arith.constant 0 : i32
    return %arg0, %c0_i32 : i32, i32
  }
  func.func @transform_1(%arg0: i32, %arg1: i32) -> (i32, i32) {
    %c0_i32 = arith.constant 0 : i32
    %c0_i32_0 = arith.constant 0 : i32
    return %c0_i32, %arg1 : i32, i32
  }
  func.func @transform_2(%arg0: i32, %arg1: i32) -> (i32, i32) {
    %c0_i32 = arith.constant 0 : i32
    %c0_i32_0 = arith.constant 0 : i32
    return %c0_i32, %arg1 : i32, i32
  }
  func.func @transform_3(%arg0: i32, %arg1: i32) -> (i32, i32) {
    %c0_i32 = arith.constant 0 : i32
    return %arg0, %arg1 : i32, i32
  }
}

</mosaic_0001>

<bundles_post_ra>
// kernel: feature_encoder_out.1
= control target key start
LH: loop header
LB: loop body
LE: loop exit
PB: predicated region body
PF: predicated region fallthrough
CT: control target
= control target key end

     0   :  { %8 = vsyncpa [#allocation3], 0  ;;  %s1808_s0 = inlined_call_operand.hbm [shape: f32[1024,128], index: 0, kind: input, shape index: {}]   ;;  %s1809_s1 = inlined_call_operand.vmem [shape: f32[128,128], index: 1, kind: input, shape index: {}]   ;;  %s1810_s2 = inlined_call_operand.vmem [shape: f32[1,128], index: 2, kind: input, shape index: {}]   ;;  %s1811_s3 = inlined_call_operand.hbm [shape: f32[1024,128], index: 3, kind: output, shape index: {}]  }
   0x1   :  { %10 = vsyncpa [#allocation3 + $0x1], 0 }
   0x2   :  { %11 = vsyncpa [#allocation4], 0 }
   0x3   :  { %13 = vsyncpa [#allocation4 + $0x1], 0  ;;  %s1379_s12 = smov 0   ;;  %s1381_s13 = smov 0  }
   0x4   :  { %s1383_s14 = smov 0   ;;  %s1385_s15 = smov 0  }
   0x5   :  { %s1387_s16 = smov 0   ;;  %s1389_s17 = smov 0  }
   0x6 LB: > { %s897_s18 = sadd.s32 4294967295, %s1351_s17   ;;  %s898_s19 = sadd.s32 4294967294, %s1351_s17   ;;  %s1351_s17 = sphi %s1389_s17, %s19_s17   ;;  %s1347_s16 = sphi %s1387_s16, %s1826_s16   ;;  %s1343_s15 = sphi %s1385_s15, %s1825_s15   ;;  %s1339_s14 = sphi %s1383_s14, %s1824_s14   ;;  %s1335_s13 = sphi %s1381_s13, %s1823_s13   ;;  %s1331_s12 = sphi %s1379_s12, %s1822_s12  }
   0x7   : > { %s31_s20 = sadd.s32 1, %s1347_s16  ;;  %s38_s21 = sadd.s32 1, %s1339_s14 }
   0x8   : > { %p33_p0 = scmp.ge.s32.totalorder %s31_s20, 2  ;;  %p45_p1 = scmp.ne.s32.totalorder %s1339_s14, %s1335_s13 }
   0x9   : > { %p46_p2 = scmp.eq.s32.totalorder %s1351_s17, 0  ;;  %p51_p3 = scmp.ne.s32.totalorder %s1335_s13, %s1331_s12 }
   0xa   : > { %s1828_s20 = smov (%p33_p0, %s31_s20), 0  ;;  %p52_p5 = scmp.eq.s32.totalorder %s897_s18, 0 }
   0xb   : > { %p1420_p4 = por %p46_p2, %p45_p1  ;;  %s35_s23 = ssub.s32 %s1347_s16, %s1828_s20 }
   0xc   : > { %p129_p6 = scmp.eq.s32.totalorder %s897_s18, 1  ;;  %p36_p7 = scmp.eq.s32.totalorder %s35_s23, 0 }
   0xd   : > { %p1426_p8 = por %p52_p5, %p51_p3  ;;  %p135_p10 = scmp.eq.s32.totalorder %s898_s19, 1 }
   0xe   : > { %p1430_p9 = por %p129_p6, %p45_p1  ;;  %p1185_p13 = scmp.lt.s32.totalorder %s1351_s17, 2 }
   0xf   : > { %s1435_s26 = scalar_select %p36_p7, %s1339_s14, %s38_s21  }
  0x10   : > { %s1815_s25 = scalar_select %p1430_p9, 1, 0 }
  0x11   : > { %p1437_p11 = por %p135_p10, %p51_p3  ;;  %s168_s28 = sand.u32 1, %s1339_s14  }
  0x12   : > { %s903_s29 = sshll.u32 %s168_s28, 9  ;;  %s915_s30 = sshll.u32 %s1347_s16, 13 }
  0x13   : > { %s1816_s27 = scalar_select %p1437_p11, 1, 0 }
  0x14   : > { %s1448_s6 = scalar_lea.hbm %s1808_s0, %s915_s30  ;;  %s172_s7 = scalar_lea.vmem [#allocation2], %s903_s29 }
  0x15   : > { %s179_s8 = sshll.u32 %s172_s7, 4  ;;  %p1454_p0 = pnand %p1185_p13, %p1420_p4  ;;  %s1450_s8 = int_to_ptr.vmem [resolvable:$true] %s179_s8 }
  0x16   : > { %s1459_s10 = scalar_lea.sflag [#allocation3], %s168_s28  ;;  %s1239_s11 = scalar_lea.hbm %s1448_s6, 8192 }
  0x17   : > { %p1240_p2 = scmp.ne.s32.totalorder %s1448_s6, %s1239_s11  ;;  %p1241_p3 = pneg %p1454_p0 }
  0x18   : > { %s1244_s21 = scalar_lea.hbm %s1808_s0, 16384  ;;  %p1245_p4 = scmp.lt.u32.totalorder %s1448_s6, %s1808_s0 }
  0x19   : > { %p1242_p5 = pnand %p1241_p3, %p1240_p2  ;;  %p1246_p7 = scmp.lt.u32.totalorder %s1244_s21, %s1239_s11 }
  0x1a   : > { %p1248_p13 = scmp.lt.u32.totalorder %s1239_s11, %s1448_s6 }
  0x1b   : > { %p1243_p6 = pneg %p1242_p5  ;;  %p1247_p10 = por %p1246_p7, %p1245_p4 }
  0x1d   : > { %p1249_p12 = por %p1248_p13, %p1247_p10 }
  0x1f   : > { %p1250_p1 = pnand %p1249_p12, %p1243_p6 }
  0x21   : > { %1253 = shalt.err (!%p1250_p1)
}
  0x22   : > { %s1254_s28 = scalar_lea.vmem %s1450_s8, 8192  ;;  %s1353_s29 = smov [#allocation2]  }
  0x23   : > { %p1255_p2 = scmp.ne.s32.totalorder %s1450_s8, %s1254_s28  ;;  %s1259_s30 = sshll.u32 %s1353_s29, 4  ;;  %s1260_s30 = int_to_ptr.vmem [resolvable:$false] %s1259_s30 }
  0x24   : > { %s1261_s4 = scalar_lea.vmem %s1260_s30, 16384  ;;  %p1262_p9 = scmp.lt.s32.totalorder %s1450_s8, %s1260_s30 }
  0x25   : > { %p1257_p5 = pnand %p1255_p2, %p1241_p3  ;;  %p1263_p4 = scmp.lt.s32.totalorder %s1261_s4, %s1254_s28 }
  0x27   : > { %p1258_p11 = pneg %p1257_p5  ;;  %p1264_p7 = por %p1263_p4, %p1262_p9 }
  0x29   : > { %p1265_p10 = pnand %p1264_p7, %p1258_p11 }
  0x2b   : > { %1268 = shalt.err (!%p1265_p10)
}
  0x2c   : > { %s1354_s5 = smov 128   ;;  %s1355_s7 = smov 8  }
  0x2d   : > { %1180 = dma.hbm_to_vmem [thread:$0]  (!%p1454_p0), %s1448_s6, 8192, %s1450_s8, %s1459_s10, %s1354_s5, %s1354_s5, %s1355_s7  }
  0x2e   : > { %p187_p12 = scmp.lt.s32.totalorder %s1351_s17, 3  ;;  %p1818_p1 = scmp.ge.s32.totalorder %s1351_s17, 1 }
  0x30   : > { %p188_p3 = pnand %p1818_p1, %p187_p12 }
  0x31   : > { %s1491_s11 = sand.u32 (!%p188_p3), 1, %s1335_s13  }
  0x32   : > { %191 = sbr.rel (%p188_p3) target bundleno = 383 (0x17f), region = 32  ;;  %s907_s18 = sshll.u32 (!%p188_p3), %s1491_s11, 9 }
  0x33   : > { %s194_s19 = scalar_lea.sflag (!%p188_p3), [#allocation3], %s1491_s11  ;;  %s1497_s21 = scalar_lea.vmem (!%p188_p3), [#allocation2], %s907_s18 }
  0x39   : > { %1322 = dma.done.wait (%p1426_p8), %s194_s19, 8192  }
  0x3a   : > { %1324 = vsyncadd (%p1426_p8), %s194_s19, 4294959104  ;;  %v300_v0 = vld [vmem:[%s1809_s1] sm:$0xff]  ;;  %v301_v1 = vld [vmem:[%s1809_s1 + $0x8] sm:$0xff]  ;;  %s773_s30 = scalar_lea.sflag [#allocation4], %s1491_s11  ;;  %p1819_p9 = scmp.ne.s32.totalorder %s1815_s25, 0 }
  0x3b   : > { %v302_v2 = vld [vmem:[%s1809_s1 + $0x10] sm:$0xff]  ;;  %v1125_v3 = vpack.c.bf16 %v301_v1, %v300_v0  ;;  %v303_v4 = vld [vmem:[%s1809_s1 + $0x18] sm:$0xff]  ;;  %v304_v6 = vld [vmem:[%s1809_s1 + $0x20] sm:$0xff]  ;;  %s1356_s5 = smov [#allocation5]  }
  0x3c   : > { %v1129_v5 = vpack.c.bf16 %v303_v4, %v302_v2  ;;  %v305_v7 = vld [vmem:[%s1809_s1 + $0x28] sm:$0xff]  ;;  %v236_v9 = vld [vmem:[%s1497_s21] sm:$0xff]  ;;  %v306_v11 = vld [vmem:[%s1809_s1 + $0x30] sm:$0xff]  ;;  %s1273_s7 = sshll.u32 %s1356_s5, 4  ;;  %s1274_s7 = int_to_ptr.vmem [resolvable:$false] %s1273_s7 }
  0x3d   : > { %1126 = vmatprep.subr.bf16.mxu0 %v1125_v3  ;;  %1157 = vmatprep.subr.bf16.mxu1 %v1125_v3  ;;  %v1133_v8 = vpack.c.bf16 %v305_v7, %v304_v6  ;;  %v268_v10 = vld [vmem:[%s1497_s21 + $0x100] sm:$0xff]  ;;  %v307_v12 = vld [vmem:[%s1809_s1 + $0x38] sm:$0xff]  ;;  %v309_v15 = vld [vmem:[%s1809_s1 + $0x48] sm:$0xff]  ;;  %s1275_s19 = scalar_lea.vmem %s1274_s7, 16384 }
  0x3e   : > { %1128 = vmatpush3.bf16.msra.mxu0 %v1125_v3  ;;  %1165 = vmatpush3.bf16.msra.mxu1 %v1125_v3  ;;  %v1137_v13 = vpack.c.bf16 %v307_v12, %v306_v11  ;;  %v308_v14 = vld [vmem:[%s1809_s1 + $0x40] sm:$0xff]  ;;  %v310_v17 = vld [vmem:[%s1809_s1 + $0x50] sm:$0xff]  ;;  %v311_v18 = vld [vmem:[%s1809_s1 + $0x58] sm:$0xff] }
  0x3f   : > { %1130 = vmatprep.subr.bf16.mxu0 %v1129_v5  ;;  %1158 = vmatprep.subr.bf16.mxu1 %v1129_v5  ;;  %v1141_v16 = vpack.c.bf16 %v309_v15, %v308_v14  ;;  %v1145_v19 = vpack.c.bf16 %v311_v18, %v310_v17  ;;  %v312_v20 = vld [vmem:[%s1809_s1 + $0x60] sm:$0xff]  ;;  %v313_v21 = vld [vmem:[%s1809_s1 + $0x68] sm:$0xff]  ;;  %v314_v23 = vld [vmem:[%s1809_s1 + $0x70] sm:$0xff] }
  0x40   : > { %1029 = vmatprep.mubr.f32.mxu0 %v236_v9  ;;  %1077 = vmatprep.mubr.f32.mxu1 %v268_v10  ;;  %v1149_v22 = vpack.c.bf16 %v313_v21, %v312_v20  ;;  %v315_v24 = vld [vmem:[%s1809_s1 + $0x78] sm:$0xff]  ;;  %v237_v26 = vld [vmem:[%s1497_s21 + $0x8] sm:$0xff]  ;;  %v238_v28 = vld [vmem:[%s1497_s21 + $0x10] sm:$0xff] }
  0x41   : > { %v1153_v25 = vpack.c.bf16 %v315_v24, %v314_v23  ;;  %v269_v27 = vld [vmem:[%s1497_s21 + $0x108] sm:$0xff]  ;;  %v270_v29 = vld [vmem:[%s1497_s21 + $0x110] sm:$0xff]  ;;  %v239_v30 = vld [vmem:[%s1497_s21 + $0x18] sm:$0xff] }
  0x42   : > { %1132 = vmatpush3.bf16.msra.mxu0 %v1129_v5  ;;  %1166 = vmatpush3.bf16.msra.mxu1 %v1129_v5  ;;  %v271_v31 = vld [vmem:[%s1497_s21 + $0x118] sm:$0xff]  ;;  %v240_v32 = vld [vmem:[%s1497_s21 + $0x20] sm:$0xff]  ;;  %v241_v34 = vld [vmem:[%s1497_s21 + $0x28] sm:$0xff] }
  0x43   : > { %1134 = vmatprep.subr.bf16.mxu0 %v1133_v8  ;;  %1159 = vmatprep.subr.bf16.mxu1 %v1133_v8  ;;  %v272_v33 = vld [vmem:[%s1497_s21 + $0x120] sm:$0xff]  ;;  %v273_v35 = vld [vmem:[%s1497_s21 + $0x128] sm:$0xff]  ;;  %v242_v36 = vld [vmem:[%s1497_s21 + $0x30] sm:$0xff] }
  0x44   : > { %v274_v37 = vld [vmem:[%s1497_s21 + $0x130] sm:$0xff]  ;;  %v243_v38 = vld [vmem:[%s1497_s21 + $0x38] sm:$0xff]  ;;  %v244_v40 = vld [vmem:[%s1497_s21 + $0x40] sm:$0xff] }
  0x45   : > { %v275_v39 = vld [vmem:[%s1497_s21 + $0x138] sm:$0xff]  ;;  %v276_v41 = vld [vmem:[%s1497_s21 + $0x140] sm:$0xff]  ;;  %v245_v42 = vld [vmem:[%s1497_s21 + $0x48] sm:$0xff] }
  0x46   : > { %1136 = vmatpush3.bf16.msra.mxu0 %v1133_v8  ;;  %1167 = vmatpush3.bf16.msra.mxu1 %v1133_v8  ;;  %v277_v43 = vld [vmem:[%s1497_s21 + $0x148] sm:$0xff]  ;;  %v246_v44 = vld [vmem:[%s1497_s21 + $0x50] sm:$0xff]  ;;  %v247_v46 = vld [vmem:[%s1497_s21 + $0x58] sm:$0xff] }
  0x47   : > { %1138 = vmatprep.subr.bf16.mxu0 %v1137_v13  ;;  %1160 = vmatprep.subr.bf16.mxu1 %v1137_v13  ;;  %v278_v45 = vld [vmem:[%s1497_s21 + $0x150] sm:$0xff]  ;;  %v279_v47 = vld [vmem:[%s1497_s21 + $0x158] sm:$0xff]  ;;  %v248_v48 = vld [vmem:[%s1497_s21 + $0x60] sm:$0xff] }
  0x48   : > { %v280_v49 = vld [vmem:[%s1497_s21 + $0x160] sm:$0xff]  ;;  %v249_v50 = vld [vmem:[%s1497_s21 + $0x68] sm:$0xff]  ;;  %v250_v52 = vld [vmem:[%s1497_s21 + $0x70] sm:$0xff] }
  0x49   : > { %v281_v51 = vld [vmem:[%s1497_s21 + $0x168] sm:$0xff]  ;;  %v282_v53 = vld [vmem:[%s1497_s21 + $0x170] sm:$0xff]  ;;  %v251_v54 = vld [vmem:[%s1497_s21 + $0x78] sm:$0xff] }
  0x4a   : > { %1140 = vmatpush3.bf16.msra.mxu0 %v1137_v13  ;;  %1168 = vmatpush3.bf16.msra.mxu1 %v1137_v13  ;;  %v283_v55 = vld [vmem:[%s1497_s21 + $0x178] sm:$0xff]  ;;  %v252_v56 = vld [vmem:[%s1497_s21 + $0x80] sm:$0xff]  ;;  %v253_v58 = vld [vmem:[%s1497_s21 + $0x88] sm:$0xff] }
  0x4b   : > { %1142 = vmatprep.subr.bf16.mxu0 %v1141_v16  ;;  %1161 = vmatprep.subr.bf16.mxu1 %v1141_v16  ;;  %v284_v57 = vld [vmem:[%s1497_s21 + $0x180] sm:$0xff]  ;;  %v285_v59 = vld [vmem:[%s1497_s21 + $0x188] sm:$0xff]  ;;  %v254_v60 = vld [vmem:[%s1497_s21 + $0x90] sm:$0xff] }
  0x4c   : > { %v286_v61 = vld [vmem:[%s1497_s21 + $0x190] sm:$0xff]  ;;  %v255_v62 = vld [vmem:[%s1497_s21 + $0x98] sm:$0xff]  ;;  %v256_v0 = vld [vmem:[%s1497_s21 + $0xa0] sm:$0xff] }
  0x4d   : > { %v287_v63 = vld [vmem:[%s1497_s21 + $0x198] sm:$0xff]  ;;  %v288_v1 = vld [vmem:[%s1497_s21 + $0x1a0] sm:$0xff]  ;;  %v257_v2 = vld [vmem:[%s1497_s21 + $0xa8] sm:$0xff] }
  0x4e   : > { %1144 = vmatpush3.bf16.msra.mxu0 %v1141_v16  ;;  %1169 = vmatpush3.bf16.msra.mxu1 %v1141_v16  ;;  %v289_v3 = vld [vmem:[%s1497_s21 + $0x1a8] sm:$0xff]  ;;  %v258_v4 = vld [vmem:[%s1497_s21 + $0xb0] sm:$0xff]  ;;  %v259_v6 = vld [vmem:[%s1497_s21 + $0xb8] sm:$0xff] }
  0x4f   : > { %1146 = vmatprep.subr.bf16.mxu0 %v1145_v19  ;;  %1162 = vmatprep.subr.bf16.mxu1 %v1145_v19  ;;  %v290_v5 = vld [vmem:[%s1497_s21 + $0x1b0] sm:$0xff]  ;;  %v291_v7 = vld [vmem:[%s1497_s21 + $0x1b8] sm:$0xff]  ;;  %v260_v8 = vld [vmem:[%s1497_s21 + $0xc0] sm:$0xff] }
  0x50   : > { %v292_v9 = vld [vmem:[%s1497_s21 + $0x1c0] sm:$0xff]  ;;  %v261_v10 = vld [vmem:[%s1497_s21 + $0xc8] sm:$0xff]  ;;  %v262_v12 = vld [vmem:[%s1497_s21 + $0xd0] sm:$0xff] }
  0x51   : > { %v293_v11 = vld [vmem:[%s1497_s21 + $0x1c8] sm:$0xff]  ;;  %v294_v13 = vld [vmem:[%s1497_s21 + $0x1d0] sm:$0xff]  ;;  %v263_v14 = vld [vmem:[%s1497_s21 + $0xd8] sm:$0xff] }
  0x52   : > { %1148 = vmatpush3.bf16.msra.mxu0 %v1145_v19  ;;  %1170 = vmatpush3.bf16.msra.mxu1 %v1145_v19  ;;  %v295_v15 = vld [vmem:[%s1497_s21 + $0x1d8] sm:$0xff]  ;;  %v264_v16 = vld [vmem:[%s1497_s21 + $0xe0] sm:$0xff]  ;;  %v265_v18 = vld [vmem:[%s1497_s21 + $0xe8] sm:$0xff] }
  0x53   : > { %1150 = vmatprep.subr.bf16.mxu0 %v1149_v22  ;;  %1163 = vmatprep.subr.bf16.mxu1 %v1149_v22  ;;  %v296_v17 = vld [vmem:[%s1497_s21 + $0x1e0] sm:$0xff]  ;;  %v297_v19 = vld [vmem:[%s1497_s21 + $0x1e8] sm:$0xff]  ;;  %v266_v20 = vld [vmem:[%s1497_s21 + $0xf0] sm:$0xff] }
  0x54   : > { %v298_v21 = vld [vmem:[%s1497_s21 + $0x1f0] sm:$0xff]  ;;  %v299_v23 = vld [vmem:[%s1497_s21 + $0x1f8] sm:$0xff]  ;;  %v1618_v24 = vld [vmem:[%s1810_s2] ss:$0 sm:$0xff] }
  0x56   : > { %1152 = vmatpush3.bf16.msra.mxu0 %v1149_v22  ;;  %1171 = vmatpush3.bf16.msra.mxu1 %v1149_v22  ;;  %v267_v22 = vld [vmem:[%s1497_s21 + $0xf8] sm:$0xff]  ;;  %s1626_s21 = scalar_lea.vmem [#allocation5], %s907_s18  ;;  %s916_s18 = sshll.u32 %s1343_s15, 13 }
  0x57   : > { %1154 = vmatprep.subr.bf16.mxu0 %v1153_v25  ;;  %1164 = vmatprep.subr.bf16.mxu1 %v1153_v25  ;;  %s787_s28 = sshll.u32 %s1626_s21, 4  ;;  %s1751_s24 = scalar_lea.hbm %s1811_s3, %s916_s18  ;;  %s1753_s28 = int_to_ptr.vmem [resolvable:$true] %s787_s28 }
  0x58   : > { %s1269_s4 = scalar_lea.vmem %s1753_s28, 8192  ;;  %p1276_p6 = scmp.lt.s32.totalorder %s1753_s28, %s1274_s7 }
  0x59   : > { %p1270_p8 = scmp.ne.s32.totalorder %s1753_s28, %s1269_s4  ;;  %p1277_p13 = scmp.lt.s32.totalorder %s1275_s19, %s1269_s4 }
  0x5a   : > { %1156 = vmatpush3.bf16.msra.mxu0 %v1153_v25  ;;  %1172 = vmatpush3.bf16.msra.mxu1 %v1153_v25 }
  0x5b   : > { %p1271_p11 = pnand %p1270_p8, %p1819_p9  ;;  %p1278_p2 = por %p1277_p13, %p1276_p6 }
  0x5d   : > { %1030 = vmatmul.mubr.f32.vlgmr.msra.gmra.mrb[0].mxu0 %v237_v26  ;;  %1078 = vmatmul.mubr.f32.vlgmr.msra.gmra.mrb[0].mxu1 %v269_v27  ;;  %p1272_p0 = pneg %p1271_p11 }
  0x5e   : > { %1032 = vmatprep.mubr.f32.mxu0 %v238_v28  ;;  %1080 = vmatprep.mubr.f32.mxu1 %v270_v29 }
  0x5f   : > { %p1279_p5 = pnand %p1278_p2, %p1272_p0 }
  0x61   : > { %1033 = vmatmul.mubr.f32.gmra.mrb[2].mxu0 %v239_v30  ;;  %1081 = vmatmul.mubr.f32.gmra.mrb[2].mxu1 %v271_v31 }
  0x62   : > { %1035 = vmatprep.mubr.f32.mxu0 %v240_v32  ;;  %1083 = vmatprep.mubr.f32.mxu1 %v272_v33 }
  0x65   : > { %1036 = vmatmul.mubr.f32.gmra.mrb[4].mxu0 %v241_v34  ;;  %1084 = vmatmul.mubr.f32.gmra.mrb[4].mxu1 %v273_v35 }
  0x66   : > { %1038 = vmatprep.mubr.f32.mxu0 %v242_v36  ;;  %1086 = vmatprep.mubr.f32.mxu1 %v274_v37 }
  0x69   : > { %1039 = vmatmul.mubr.f32.gmra.mrb[6].mxu0 %v243_v38  ;;  %1087 = vmatmul.mubr.f32.gmra.mrb[6].mxu1 %v275_v39 }
  0x6a   : > { %1041 = vmatprep.mubr.f32.mxu0 %v244_v40  ;;  %1089 = vmatprep.mubr.f32.mxu1 %v276_v41 }
  0x6d   : > { %1042 = vmatmul.mubr.f32.gmra.mrb[8].mxu0 %v245_v42  ;;  %1090 = vmatmul.mubr.f32.gmra.mrb[8].mxu1 %v277_v43 }
  0x6e   : > { %1044 = vmatprep.mubr.f32.mxu0 %v246_v44  ;;  %1092 = vmatprep.mubr.f32.mxu1 %v278_v45 }
  0x71   : > { %1045 = vmatmul.mubr.f32.gmra.mrb[10].mxu0 %v247_v46  ;;  %1093 = vmatmul.mubr.f32.gmra.mrb[10].mxu1 %v279_v47 }
  0x72   : > { %1047 = vmatprep.mubr.f32.mxu0 %v248_v48  ;;  %1095 = vmatprep.mubr.f32.mxu1 %v280_v49 }
  0x75   : > { %1048 = vmatmul.mubr.f32.gmra.mrb[12].mxu0 %v249_v50  ;;  %1096 = vmatmul.mubr.f32.gmra.mrb[12].mxu1 %v281_v51 }
  0x76   : > { %1050 = vmatprep.mubr.f32.mxu0 %v250_v52  ;;  %1098 = vmatprep.mubr.f32.mxu1 %v282_v53 }
  0x79   : > { %1051 = vmatmul.mubr.f32.gmra.mrb[14].mxu0 %v251_v54  ;;  %1099 = vmatmul.mubr.f32.gmra.mrb[14].mxu1 %v283_v55 }
  0x7a   : > { %1053 = vmatprep.mubr.f32.mxu0 %v252_v56  ;;  %1101 = vmatprep.mubr.f32.mxu1 %v284_v57 }
  0x7d   : > { %1054 = vmatmul.mubr.f32.gmra.mrb[16].mxu0 %v253_v58  ;;  %1102 = vmatmul.mubr.f32.gmra.mrb[16].mxu1 %v285_v59 }
  0x7e   : > { %1056 = vmatprep.mubr.f32.mxu0 %v254_v60  ;;  %1104 = vmatprep.mubr.f32.mxu1 %v286_v61 }
  0x81   : > { %1057 = vmatmul.mubr.f32.gmra.mrb[18].mxu0 %v255_v62  ;;  %1105 = vmatmul.mubr.f32.gmra.mrb[18].mxu1 %v287_v63 }
  0x82   : > { %1059 = vmatprep.mubr.f32.mxu0 %v256_v0  ;;  %1107 = vmatprep.mubr.f32.mxu1 %v288_v1 }
  0x85   : > { %1060 = vmatmul.mubr.f32.gmra.mrb[20].mxu0 %v257_v2  ;;  %1108 = vmatmul.mubr.f32.gmra.mrb[20].mxu1 %v289_v3 }
  0x86   : > { %1062 = vmatprep.mubr.f32.mxu0 %v258_v4  ;;  %1110 = vmatprep.mubr.f32.mxu1 %v290_v5 }
  0x89   : > { %1063 = vmatmul.mubr.f32.gmra.mrb[22].mxu0 %v259_v6  ;;  %1111 = vmatmul.mubr.f32.gmra.mrb[22].mxu1 %v291_v7 }
  0x8a   : > { %1065 = vmatprep.mubr.f32.mxu0 %v260_v8  ;;  %1113 = vmatprep.mubr.f32.mxu1 %v292_v9 }
  0x8d   : > { %1066 = vmatmul.mubr.f32.gmra.mrb[24].mxu0 %v261_v10  ;;  %1114 = vmatmul.mubr.f32.gmra.mrb[24].mxu1 %v293_v11 }
  0x8e   : > { %1068 = vmatprep.mubr.f32.mxu0 %v262_v12  ;;  %1116 = vmatprep.mubr.f32.mxu1 %v294_v13 }
  0x91   : > { %1069 = vmatmul.mubr.f32.gmra.mrb[26].mxu0 %v263_v14  ;;  %1117 = vmatmul.mubr.f32.gmra.mrb[26].mxu1 %v295_v15 }
  0x92   : > { %1071 = vmatprep.mubr.f32.mxu0 %v264_v16  ;;  %1119 = vmatprep.mubr.f32.mxu1 %v296_v17 }
  0x95   : > { %1072 = vmatmul.mubr.f32.gmra.mrb[28].mxu0 %v265_v18  ;;  %1120 = vmatmul.mubr.f32.gmra.mrb[28].mxu1 %v297_v19 }
  0x96   : > { %1074 = vmatprep.mubr.f32.mxu0 %v266_v20  ;;  %1122 = vmatprep.mubr.f32.mxu1 %v298_v21 }
  0x99   : > { %1075 = vmatmul.mubr.f32.gmra.mrb[30].mxu0 %v267_v22  ;;  %1123 = vmatmul.mubr.f32.gmra.mrb[30].mxu1 %v299_v23 }
 0x130   : > { %v1031_v25 = vpop.f32.mrb[0].mxu0  ;;  %v1079_v26 = vpop.f32.mrb[0].mxu1 }
 0x131   : > { %v395_v27 = vadd.f32 %v1031_v25, %v1618_v24  ;;  %v555_v28 = vadd.f32 %v1079_v26, %v1618_v24  ;;  %v389_v29 = vpop.f32.mrb[1].mxu0  ;;  %v549_v30 = vpop.f32.mrb[1].mxu1 }
 0x132   : > { %v390_v31 = vadd.f32 %v1618_v24, %v389_v29  ;;  %v550_v32 = vadd.f32 %v1618_v24, %v549_v30 }
 0x133   : > { %709 = vst [vmem:[%s1626_s21 + $0x8] sm:$0xff] %v395_v27  ;;  %741 = vst [vmem:[%s1626_s21 + $0x108] sm:$0xff] %v555_v28 }
 0x134   : > { %708 = vst [vmem:[%s1626_s21] sm:$0xff] %v390_v31  ;;  %740 = vst [vmem:[%s1626_s21 + $0x100] sm:$0xff] %v550_v32  ;;  %v1034_v33 = vpop.f32.mrb[2].mxu0  ;;  %v1082_v34 = vpop.f32.mrb[2].mxu1 }
 0x135   : > { %v405_v35 = vadd.f32 %v1034_v33, %v1618_v24  ;;  %v565_v36 = vadd.f32 %v1082_v34, %v1618_v24  ;;  %v399_v37 = vpop.f32.mrb[3].mxu0  ;;  %v559_v38 = vpop.f32.mrb[3].mxu1 }
 0x136   : > { %v400_v39 = vadd.f32 %v1618_v24, %v399_v37  ;;  %v560_v40 = vadd.f32 %v1618_v24, %v559_v38 }
 0x137   : > { %711 = vst [vmem:[%s1626_s21 + $0x18] sm:$0xff] %v405_v35  ;;  %743 = vst [vmem:[%s1626_s21 + $0x118] sm:$0xff] %v565_v36 }
 0x138   : > { %710 = vst [vmem:[%s1626_s21 + $0x10] sm:$0xff] %v400_v39  ;;  %742 = vst [vmem:[%s1626_s21 + $0x110] sm:$0xff] %v560_v40  ;;  %v1037_v41 = vpop.f32.mrb[4].mxu0  ;;  %v1085_v42 = vpop.f32.mrb[4].mxu1 }
 0x139   : > { %v415_v43 = vadd.f32 %v1037_v41, %v1618_v24  ;;  %v575_v44 = vadd.f32 %v1085_v42, %v1618_v24  ;;  %v409_v45 = vpop.f32.mrb[5].mxu0  ;;  %v569_v46 = vpop.f32.mrb[5].mxu1 }
 0x13a   : > { %v410_v47 = vadd.f32 %v1618_v24, %v409_v45  ;;  %v570_v48 = vadd.f32 %v1618_v24, %v569_v46 }
 0x13b   : > { %713 = vst [vmem:[%s1626_s21 + $0x28] sm:$0xff] %v415_v43  ;;  %745 = vst [vmem:[%s1626_s21 + $0x128] sm:$0xff] %v575_v44 }
 0x13c   : > { %712 = vst [vmem:[%s1626_s21 + $0x20] sm:$0xff] %v410_v47  ;;  %744 = vst [vmem:[%s1626_s21 + $0x120] sm:$0xff] %v570_v48  ;;  %v1040_v49 = vpop.f32.mrb[6].mxu0  ;;  %v1088_v50 = vpop.f32.mrb[6].mxu1 }
 0x13d   : > { %v425_v51 = vadd.f32 %v1040_v49, %v1618_v24  ;;  %v585_v52 = vadd.f32 %v1088_v50, %v1618_v24  ;;  %v419_v53 = vpop.f32.mrb[7].mxu0  ;;  %v579_v54 = vpop.f32.mrb[7].mxu1 }
 0x13e   : > { %v420_v55 = vadd.f32 %v1618_v24, %v419_v53  ;;  %v580_v56 = vadd.f32 %v1618_v24, %v579_v54 }
 0x13f   : > { %715 = vst [vmem:[%s1626_s21 + $0x38] sm:$0xff] %v425_v51  ;;  %747 = vst [vmem:[%s1626_s21 + $0x138] sm:$0xff] %v585_v52 }
 0x140   : > { %714 = vst [vmem:[%s1626_s21 + $0x30] sm:$0xff] %v420_v55  ;;  %746 = vst [vmem:[%s1626_s21 + $0x130] sm:$0xff] %v580_v56  ;;  %v1043_v57 = vpop.f32.mrb[8].mxu0  ;;  %v1091_v58 = vpop.f32.mrb[8].mxu1 }
 0x141   : > { %v435_v59 = vadd.f32 %v1043_v57, %v1618_v24  ;;  %v595_v60 = vadd.f32 %v1091_v58, %v1618_v24  ;;  %v429_v61 = vpop.f32.mrb[9].mxu0  ;;  %v589_v62 = vpop.f32.mrb[9].mxu1 }
 0x142   : > { %v430_v63 = vadd.f32 %v1618_v24, %v429_v61  ;;  %v590_v0 = vadd.f32 %v1618_v24, %v589_v62 }
 0x143   : > { %717 = vst [vmem:[%s1626_s21 + $0x48] sm:$0xff] %v435_v59  ;;  %749 = vst [vmem:[%s1626_s21 + $0x148] sm:$0xff] %v595_v60 }
 0x144   : > { %716 = vst [vmem:[%s1626_s21 + $0x40] sm:$0xff] %v430_v63  ;;  %748 = vst [vmem:[%s1626_s21 + $0x140] sm:$0xff] %v590_v0  ;;  %v1046_v1 = vpop.f32.mrb[10].mxu0  ;;  %v1094_v2 = vpop.f32.mrb[10].mxu1 }
 0x145   : > { %v445_v3 = vadd.f32 %v1046_v1, %v1618_v24  ;;  %v605_v4 = vadd.f32 %v1094_v2, %v1618_v24  ;;  %v439_v5 = vpop.f32.mrb[11].mxu0  ;;  %v599_v6 = vpop.f32.mrb[11].mxu1 }
 0x146   : > { %v440_v7 = vadd.f32 %v1618_v24, %v439_v5  ;;  %v600_v8 = vadd.f32 %v1618_v24, %v599_v6 }
 0x147   : > { %719 = vst [vmem:[%s1626_s21 + $0x58] sm:$0xff] %v445_v3  ;;  %751 = vst [vmem:[%s1626_s21 + $0x158] sm:$0xff] %v605_v4 }
 0x148   : > { %718 = vst [vmem:[%s1626_s21 + $0x50] sm:$0xff] %v440_v7  ;;  %750 = vst [vmem:[%s1626_s21 + $0x150] sm:$0xff] %v600_v8  ;;  %v1049_v9 = vpop.f32.mrb[12].mxu0  ;;  %v1097_v10 = vpop.f32.mrb[12].mxu1 }
 0x149   : > { %v455_v11 = vadd.f32 %v1049_v9, %v1618_v24  ;;  %v615_v12 = vadd.f32 %v1097_v10, %v1618_v24  ;;  %v449_v13 = vpop.f32.mrb[13].mxu0  ;;  %v609_v14 = vpop.f32.mrb[13].mxu1 }
 0x14a   : > { %v450_v15 = vadd.f32 %v1618_v24, %v449_v13  ;;  %v610_v16 = vadd.f32 %v1618_v24, %v609_v14 }
 0x14b   : > { %721 = vst [vmem:[%s1626_s21 + $0x68] sm:$0xff] %v455_v11  ;;  %753 = vst [vmem:[%s1626_s21 + $0x168] sm:$0xff] %v615_v12 }
 0x14c   : > { %720 = vst [vmem:[%s1626_s21 + $0x60] sm:$0xff] %v450_v15  ;;  %752 = vst [vmem:[%s1626_s21 + $0x160] sm:$0xff] %v610_v16  ;;  %v1052_v17 = vpop.f32.mrb[14].mxu0  ;;  %v1100_v18 = vpop.f32.mrb[14].mxu1 }
 0x14d   : > { %v465_v19 = vadd.f32 %v1052_v17, %v1618_v24  ;;  %v625_v20 = vadd.f32 %v1100_v18, %v1618_v24  ;;  %v459_v21 = vpop.f32.mrb[15].mxu0  ;;  %v619_v22 = vpop.f32.mrb[15].mxu1 }
 0x14e   : > { %v460_v23 = vadd.f32 %v1618_v24, %v459_v21  ;;  %v620_v25 = vadd.f32 %v1618_v24, %v619_v22 }
 0x14f   : > { %723 = vst [vmem:[%s1626_s21 + $0x78] sm:$0xff] %v465_v19  ;;  %755 = vst [vmem:[%s1626_s21 + $0x178] sm:$0xff] %v625_v20 }
 0x150   : > { %722 = vst [vmem:[%s1626_s21 + $0x70] sm:$0xff] %v460_v23  ;;  %754 = vst [vmem:[%s1626_s21 + $0x170] sm:$0xff] %v620_v25  ;;  %v1055_v26 = vpop.f32.mrb[16].mxu0  ;;  %v1103_v27 = vpop.f32.mrb[16].mxu1 }
 0x151   : > { %v475_v28 = vadd.f32 %v1055_v26, %v1618_v24  ;;  %v635_v29 = vadd.f32 %v1103_v27, %v1618_v24  ;;  %v469_v30 = vpop.f32.mrb[17].mxu0  ;;  %v629_v31 = vpop.f32.mrb[17].mxu1 }
 0x152   : > { %v470_v32 = vadd.f32 %v1618_v24, %v469_v30  ;;  %v630_v33 = vadd.f32 %v1618_v24, %v629_v31 }
 0x153   : > { %725 = vst [vmem:[%s1626_s21 + $0x88] sm:$0xff] %v475_v28  ;;  %757 = vst [vmem:[%s1626_s21 + $0x188] sm:$0xff] %v635_v29 }
 0x154   : > { %724 = vst [vmem:[%s1626_s21 + $0x80] sm:$0xff] %v470_v32  ;;  %756 = vst [vmem:[%s1626_s21 + $0x180] sm:$0xff] %v630_v33  ;;  %v1058_v34 = vpop.f32.mrb[18].mxu0  ;;  %v1106_v35 = vpop.f32.mrb[18].mxu1 }
 0x155   : > { %v485_v36 = vadd.f32 %v1058_v34, %v1618_v24  ;;  %v645_v37 = vadd.f32 %v1106_v35, %v1618_v24  ;;  %v479_v38 = vpop.f32.mrb[19].mxu0  ;;  %v639_v39 = vpop.f32.mrb[19].mxu1 }
 0x156   : > { %v480_v40 = vadd.f32 %v1618_v24, %v479_v38  ;;  %v640_v41 = vadd.f32 %v1618_v24, %v639_v39 }
 0x157   : > { %727 = vst [vmem:[%s1626_s21 + $0x98] sm:$0xff] %v485_v36  ;;  %759 = vst [vmem:[%s1626_s21 + $0x198] sm:$0xff] %v645_v37 }
 0x158   : > { %726 = vst [vmem:[%s1626_s21 + $0x90] sm:$0xff] %v480_v40  ;;  %758 = vst [vmem:[%s1626_s21 + $0x190] sm:$0xff] %v640_v41  ;;  %v1061_v42 = vpop.f32.mrb[20].mxu0  ;;  %v1109_v43 = vpop.f32.mrb[20].mxu1 }
 0x159   : > { %v495_v44 = vadd.f32 %v1061_v42, %v1618_v24  ;;  %v655_v45 = vadd.f32 %v1109_v43, %v1618_v24  ;;  %v489_v46 = vpop.f32.mrb[21].mxu0  ;;  %v649_v47 = vpop.f32.mrb[21].mxu1 }
 0x15a   : > { %v490_v48 = vadd.f32 %v1618_v24, %v489_v46  ;;  %v650_v49 = vadd.f32 %v1618_v24, %v649_v47 }
 0x15b   : > { %729 = vst [vmem:[%s1626_s21 + $0xa8] sm:$0xff] %v495_v44  ;;  %761 = vst [vmem:[%s1626_s21 + $0x1a8] sm:$0xff] %v655_v45 }
 0x15c   : > { %728 = vst [vmem:[%s1626_s21 + $0xa0] sm:$0xff] %v490_v48  ;;  %760 = vst [vmem:[%s1626_s21 + $0x1a0] sm:$0xff] %v650_v49  ;;  %v1064_v50 = vpop.f32.mrb[22].mxu0  ;;  %v1112_v51 = vpop.f32.mrb[22].mxu1 }
 0x15d   : > { %v505_v52 = vadd.f32 %v1064_v50, %v1618_v24  ;;  %v665_v53 = vadd.f32 %v1112_v51, %v1618_v24  ;;  %v499_v54 = vpop.f32.mrb[23].mxu0  ;;  %v659_v55 = vpop.f32.mrb[23].mxu1 }
 0x15e   : > { %v500_v56 = vadd.f32 %v1618_v24, %v499_v54  ;;  %v660_v57 = vadd.f32 %v1618_v24, %v659_v55 }
 0x15f   : > { %731 = vst [vmem:[%s1626_s21 + $0xb8] sm:$0xff] %v505_v52  ;;  %763 = vst [vmem:[%s1626_s21 + $0x1b8] sm:$0xff] %v665_v53 }
 0x160   : > { %730 = vst [vmem:[%s1626_s21 + $0xb0] sm:$0xff] %v500_v56  ;;  %762 = vst [vmem:[%s1626_s21 + $0x1b0] sm:$0xff] %v660_v57  ;;  %v1067_v58 = vpop.f32.mrb[24].mxu0  ;;  %v1115_v59 = vpop.f32.mrb[24].mxu1 }
 0x161   : > { %v515_v60 = vadd.f32 %v1067_v58, %v1618_v24  ;;  %v675_v61 = vadd.f32 %v1115_v59, %v1618_v24  ;;  %v509_v62 = vpop.f32.mrb[25].mxu0  ;;  %v669_v63 = vpop.f32.mrb[25].mxu1 }
 0x162   : > { %v510_v0 = vadd.f32 %v1618_v24, %v509_v62  ;;  %v670_v1 = vadd.f32 %v1618_v24, %v669_v63 }
 0x163   : > { %733 = vst [vmem:[%s1626_s21 + $0xc8] sm:$0xff] %v515_v60  ;;  %765 = vst [vmem:[%s1626_s21 + $0x1c8] sm:$0xff] %v675_v61 }
 0x164   : > { %732 = vst [vmem:[%s1626_s21 + $0xc0] sm:$0xff] %v510_v0  ;;  %764 = vst [vmem:[%s1626_s21 + $0x1c0] sm:$0xff] %v670_v1  ;;  %v1070_v2 = vpop.f32.mrb[26].mxu0  ;;  %v1118_v3 = vpop.f32.mrb[26].mxu1 }
 0x165   : > { %v525_v4 = vadd.f32 %v1070_v2, %v1618_v24  ;;  %v685_v5 = vadd.f32 %v1118_v3, %v1618_v24  ;;  %v519_v6 = vpop.f32.mrb[27].mxu0  ;;  %v679_v7 = vpop.f32.mrb[27].mxu1 }
 0x166   : > { %v520_v8 = vadd.f32 %v1618_v24, %v519_v6  ;;  %v680_v9 = vadd.f32 %v1618_v24, %v679_v7 }
 0x167   : > { %735 = vst [vmem:[%s1626_s21 + $0xd8] sm:$0xff] %v525_v4  ;;  %767 = vst [vmem:[%s1626_s21 + $0x1d8] sm:$0xff] %v685_v5 }
 0x168   : > { %734 = vst [vmem:[%s1626_s21 + $0xd0] sm:$0xff] %v520_v8  ;;  %766 = vst [vmem:[%s1626_s21 + $0x1d0] sm:$0xff] %v680_v9  ;;  %v1073_v10 = vpop.f32.mrb[28].mxu0  ;;  %v1121_v11 = vpop.f32.mrb[28].mxu1 }
 0x169   : > { %v535_v12 = vadd.f32 %v1073_v10, %v1618_v24  ;;  %v695_v13 = vadd.f32 %v1121_v11, %v1618_v24  ;;  %v529_v14 = vpop.f32.mrb[29].mxu0  ;;  %v689_v15 = vpop.f32.mrb[29].mxu1 }
 0x16a   : > { %v530_v16 = vadd.f32 %v1618_v24, %v529_v14  ;;  %v690_v17 = vadd.f32 %v1618_v24, %v689_v15 }
 0x16b   : > { %737 = vst [vmem:[%s1626_s21 + $0xe8] sm:$0xff] %v535_v12  ;;  %769 = vst [vmem:[%s1626_s21 + $0x1e8] sm:$0xff] %v695_v13 }
 0x16c   : > { %736 = vst [vmem:[%s1626_s21 + $0xe0] sm:$0xff] %v530_v16  ;;  %768 = vst [vmem:[%s1626_s21 + $0x1e0] sm:$0xff] %v690_v17  ;;  %v1076_v18 = vpop.f32.mrb[30].mxu0  ;;  %v1124_v19 = vpop.f32.mrb[30].mxu1 }
 0x16d   : > { %v545_v20 = vadd.f32 %v1076_v18, %v1618_v24  ;;  %v705_v21 = vadd.f32 %v1124_v19, %v1618_v24  ;;  %v539_v22 = vpop.f32.mrb[31].mxu0  ;;  %v699_v23 = vpop.f32.mrb[31].mxu1 }
 0x16e   : > { %v540_v25 = vadd.f32 %v1618_v24, %v539_v22  ;;  %v700_v26 = vadd.f32 %v1618_v24, %v699_v23 }
 0x16f   : > { %739 = vst [vmem:[%s1626_s21 + $0xf8] sm:$0xff] %v545_v20  ;;  %771 = vst [vmem:[%s1626_s21 + $0x1f8] sm:$0xff] %v705_v21 }
 0x170   : > { %738 = vst [vmem:[%s1626_s21 + $0xf0] sm:$0xff] %v540_v25  ;;  %770 = vst [vmem:[%s1626_s21 + $0x1f0] sm:$0xff] %v700_v26 }
 0x171   : > { %1282 = shalt.err (!%p1279_p5)
}
 0x172   : > { %s1283_s6 = scalar_lea.hbm %s1751_s24, 8192  ;;  %s1287_s10 = scalar_lea.hbm %s1811_s3, 16384 }
 0x173   : > { %p1284_p4 = scmp.ne.s32.totalorder %s1751_s24, %s1283_s6  ;;  %p1288_p12 = scmp.lt.u32.totalorder %s1751_s24, %s1811_s3 }
 0x174   : > { %p1289_p1 = scmp.lt.u32.totalorder %s1287_s10, %s1283_s6  ;;  %p1291_p8 = scmp.lt.u32.totalorder %s1283_s6, %s1751_s24 }
 0x175   : > { %p1285_p7 = pnand %p1284_p4, %p1819_p9 }
 0x176   : > { %p1290_p3 = por %p1289_p1, %p1288_p12 }
 0x177   : > { %p1286_p10 = pneg %p1285_p7 }
 0x178   : > { %p1292_p11 = por %p1291_p8, %p1290_p3 }
 0x17a   : > { %p1293_p0 = pnand %p1292_p11, %p1286_p10 }
 0x17c   : > { %1296 = shalt.err (!%p1293_p0)
}
 0x17d   : > { %s1357_s21 = smov 128   ;;  %s1358_s18 = smov 8  }
 0x17e   : > { %1175 = dma.vmem_to_hbm [thread:$0]  (%p1819_p9), %s1753_s28, 8192, %s1751_s24, %s773_s30, %s1357_s21, %s1357_s21, %s1358_s18  }
 0x17f PF: > { %s802_s15 = sand.u32 1, %s1331_s12   ;;  %p1820_p6 = scmp.ne.s32.totalorder %s1816_s27, 0 }
 0x180   : > { %p1821_p13 = scmp.ge.s32.totalorder %s1351_s17, 2  ;;  %s803_s29 = scalar_lea.sflag [#allocation4], %s802_s15 }
 0x182   : > { %p1182_p2 = pnand %p1821_p13, %p1820_p6 }
 0x184   : > { %1326 = dma.done.wait (!%p1182_p2), %s803_s29, 8192  }
 0x185   : > { %1328 = vsyncadd (!%p1182_p2), %s803_s29, 4294959104  ;;  %s19_s17 = sadd.s32 1, %s1351_s17   ;;  %s1822_s12 = smov %s1335_s13 }
 0x186   : > { %p16_p5 = scmp.ge.s32.totalorder %s19_s17, 4   ;;  %s1823_s13 = smov %s1339_s14 }
 0x187   : > { %s1824_s14 = smov %s1435_s26  ;;  %s1825_s15 = smov %s1347_s16 }
 0x188   : > { %s1826_s16 = smov %s1828_s20  ;;  %18 = sbr.rel (!%p16_p5) target bundleno = 6 (0x6), region = 83 }
 0x18f   :  { %808 = vsyncpa [#allocation3], 1 }
 0x190   :  { %810 = vsyncpa [#allocation3 + $0x1], 1 }
 0x191   :  { %811 = vsyncpa [#allocation4], 1 }
 0x192   :  { %813 = vsyncpa [#allocation4 + $0x1], 1 }

</bundles_post_ra>
